<compile_context>
chip_gen: v7x
topology: tpu7x:2x2x1
jax: 0.10.0
libtpu: 0.0.40
codegen_flags: <defaults>
</compile_context>

<pallas_src>
import jax
import jax.numpy as jnp
from jax.experimental import pallas as pl
from jax.experimental.pallas import tpu as pltpu

FP8_E4M3_MAX = 448.0       # torch.finfo(torch.float8_e4m3fn).max
SCALE_EPS = 1e-12

_SMEM_SPEC = pl.BlockSpec(memory_space=pltpu.MemorySpace.SMEM)


def _round_up(x, m):
    return ((x + m - 1) // m) * m


# ----------------------------- kernels ------------------------------------ #

def _amax_kernel(x_ref, o_ref):
    # Running max(|x|): output block index is constant along the k axis, so the
    # (8,128) block stays resident and accumulates across K ("arbitrary" axis).
    k = pl.program_id(1)

    @pl.when(k == 0)
    def _():
        o_ref[...] = jnp.zeros_like(o_ref)

    tile_amax = jnp.max(jnp.abs(x_ref[...].astype(jnp.float32)))
    o_ref[...] = jnp.maximum(o_ref[...], tile_amax)


def _quantize_kernel(inv_s_ref, x_ref, q_ref):
    # qinput = clamp(x / scale, +-448) cast to float8_e4m3fn (native RNE cast),
    # stored as bf16 (exact).  Only used when gn > 1 (qx reused across N tiles).
    inv_s = inv_s_ref[0, 0]
    q = jnp.clip(x_ref[...].astype(jnp.float32) * inv_s,
                 -FP8_E4M3_MAX, FP8_E4M3_MAX)
    q_ref[...] = q.astype(jnp.float8_e4m3fn).astype(q_ref.dtype)


def _make_qmm_kernel(fuse_quant, emit_amax, mask_rows, m_rows):
    """Specialized matmul kernel.

    fuse_quant: quantize the activation tile inline (skip the qx pass).
    emit_amax : emit a per-tile |out| max second output (quantize_output path).
    mask_rows : statically known padded rows exist -> mask them out of the amax.
    m_rows    : static number of real rows.
    """
    def kernel(*refs):
        if fuse_quant:
            cs_ref, inv_xs_ref = refs[0], refs[1]
            x_ref, w_ref, b_ref = refs[2], refs[3], refs[4]
            rest = refs[5:]
        else:
            cs_ref = refs[0]
            x_ref, w_ref, b_ref = refs[1], refs[2], refs[3]
            rest = refs[4:]
        if emit_amax:
            o_ref, oamax_ref, acc_ref = rest
        else:
            o_ref, acc_ref = rest

        k = pl.program_id(2)
        last_k = pl.num_programs(2) - 1
        # Hoisted out of the pl.when bodies: program_id bound inside a cond
        # sub-jaxpr does not lower under the interpret fallback.
        row_base = pl.program_id(0) * o_ref.shape[0]

        @pl.when(k == 0)
        def _():
            acc_ref[...] = jnp.zeros_like(acc_ref)

        if fuse_quant:
            q = jnp.clip(x_ref[...].astype(jnp.float32) * inv_xs_ref[0, 0],
                         -FP8_E4M3_MAX, FP8_E4M3_MAX)
            lhs = q.astype(jnp.float8_e4m3fn).astype(jnp.bfloat16)
        else:
            lhs = x_ref[...]                       # already-quantized bf16
        # Weight lives in HBM/VMEM as fp8-e4m3 (half the bytes); upcast to bf16
        # for the MXU.  (tk, tn) layout -> plain (tm,tk)@(tk,tn), no transpose.
        rhs = w_ref[...].astype(jnp.bfloat16)

        acc_ref[...] += jnp.dot(lhs, rhs, preferred_element_type=jnp.float32)

        @pl.when(k == last_k)
        def _():
            out = acc_ref[...] * cs_ref[0, 0] + b_ref[...]
            out_cast = out.astype(o_ref.dtype)
            o_ref[...] = out_cast
            if emit_amax:
                a = jnp.abs(out_cast.astype(jnp.float32))
                if mask_rows:
                    row = jax.lax.broadcasted_iota(jnp.int32, a.shape, 0) + row_base
                    a = jnp.where(row < m_rows, a, 0.0)
                oamax_ref[...] = jnp.full(oamax_ref.shape, jnp.max(a), jnp.float32)

    return kernel


def _requant_kernel(inv_s_ref, s_ref, x_ref, o_ref):
    # Output "quantization" of the torch module: divide/clamp/multiply,
    # with NO fp8 cast (matches the PyTorch code exactly).
    q = jnp.clip(x_ref[...].astype(jnp.float32) * inv_s_ref[0, 0],
                 -FP8_E4M3_MAX, FP8_E4M3_MAX)
    o_ref[...] = (q * s_ref[0, 0]).astype(o_ref.dtype)


# ----------------------------- wrappers ------------------------------------ #

def _per_tensor_amax(xp, tm, tk):
    mp, kp = xp.shape
    gm, gk = mp // tm, kp // tk
    partials = pl.pallas_call(
        _amax_kernel,
        out_shape=jax.ShapeDtypeStruct((gm * 8, 128), jnp.float32),
        grid=(gm, gk),
        in_specs=[pl.BlockSpec((tm, tk), lambda i, k: (i, k))],
        out_specs=pl.BlockSpec((8, 128), lambda i, k: (i, 0)),
        compiler_params=pltpu.CompilerParams(
            dimension_semantics=("parallel", "arbitrary")),
    )(xp)
    return jnp.max(partials)


def _quantize_to_bf16(xp, inv_scale, tm, tk):
    mp, kp = xp.shape
    return pl.pallas_call(
        _quantize_kernel,
        out_shape=jax.ShapeDtypeStruct((mp, kp), jnp.bfloat16),
        grid=(mp // tm, kp // tk),
        in_specs=[_SMEM_SPEC,
                  pl.BlockSpec((tm, tk), lambda i, k: (i, k))],
        out_specs=pl.BlockSpec((tm, tk), lambda i, k: (i, k)),
        compiler_params=pltpu.CompilerParams(
            dimension_semantics=("parallel", "parallel")),
    )(inv_scale, xp)


def _fp8_matmul(lhs, wq_kn, bias_row, combined_scale, inv_x_scale,
                fuse_quant, emit_amax, m_rows, out_dtype, tm, tn, tk):
    mp, kp = lhs.shape
    _, np_ = wq_kn.shape
    gm, gn, gk = mp // tm, np_ // tn, kp // tk
    mask_rows = bool(emit_amax and (mp != m_rows))

    kernel = _make_qmm_kernel(fuse_quant, emit_amax, mask_rows, m_rows)

    in_specs = [_SMEM_SPEC]                                   # x_scale*w_scale
    args = [combined_scale]
    if fuse_quant:
        in_specs.append(_SMEM_SPEC)                           # 1/x_scale
        args.append(inv_x_scale)
    in_specs += [
        pl.BlockSpec((tm, tk), lambda i, j, k: (i, k)),       # x or quantized x
        pl.BlockSpec((tk, tn), lambda i, j, k: (k, j)),       # weight (K,N) fp8
        pl.BlockSpec((1, tn), lambda i, j, k: (0, j)),        # bias row
    ]
    args += [lhs, wq_kn, bias_row]

    if emit_amax:
        out_shape = (jax.ShapeDtypeStruct((mp, np_), out_dtype),
                     jax.ShapeDtypeStruct((gm * 8, gn * 128), jnp.float32))
        out_specs = (pl.BlockSpec((tm, tn), lambda i, j, k: (i, j)),
                     pl.BlockSpec((8, 128), lambda i, j, k: (i, j)))
    else:
        out_shape = jax.ShapeDtypeStruct((mp, np_), out_dtype)
        out_specs = pl.BlockSpec((tm, tn), lambda i, j, k: (i, j))

    return pl.pallas_call(
        kernel,
        out_shape=out_shape,
        grid=(gm, gn, gk),
        in_specs=in_specs,
        out_specs=out_specs,
        scratch_shapes=[pltpu.VMEM((tm, tn), jnp.float32)],
        compiler_params=pltpu.CompilerParams(
            dimension_semantics=("parallel", "parallel", "arbitrary")),
    )(*args)


def _requant_output(outp, inv_scale, scale, tm, tn):
    mp, np_ = outp.shape
    return pl.pallas_call(
        _requant_kernel,
        out_shape=jax.ShapeDtypeStruct((mp, np_), outp.dtype),
        grid=(mp // tm, np_ // tn),
        in_specs=[_SMEM_SPEC, _SMEM_SPEC,
                  pl.BlockSpec((tm, tn), lambda i, j: (i, j))],
        out_specs=pl.BlockSpec((tm, tn), lambda i, j: (i, j)),
        compiler_params=pltpu.CompilerParams(
            dimension_semantics=("parallel", "parallel")),
    )(inv_scale, scale, outp)


class FP8StaticLinearQuantizer:
    """JAX/Pallas port of the PyTorch FP8StaticLinearQuantizer forward."""

    def __init__(self, in_features, out_features, qweight, weight_scale,
                 bias=None, quantize_output=False,
                 tile_m=256, tile_n=512, tile_k=512):
        self.in_features = in_features
        self.out_features = out_features
        self.quantize_output = quantize_output

        self.tile_m = tile_m
        self.tile_n = min(tile_n, _round_up(out_features, 128))
        self.tile_k = min(tile_k, _round_up(in_features, 128))
        self._np = _round_up(out_features, self.tile_n)
        self._kp = _round_up(in_features, self.tile_k)

        # self.qweight.to(qdtype): snap to fp8-e4m3 once at init.  Stored as
        # float8_e4m3fn in (K, N) layout: half the HBM/VMEM bytes and the hot
        # loop is a plain (tm,tk)@(tk,tn) contraction (no per-step transpose).
        w = jnp.asarray(qweight, jnp.float32).T                  # (in, out)
        w = jnp.pad(w, ((0, self._kp - in_features),
                        (0, self._np - out_features)))
        w = jnp.clip(w, -FP8_E4M3_MAX, FP8_E4M3_MAX)
        self.qweight = w.astype(jnp.float8_e4m3fn)               # (kp, np)
        self.weight_scale = jnp.asarray(weight_scale, jnp.float32).reshape(())
        b = (jnp.zeros((out_features,), jnp.float32) if bias is None
             else jnp.asarray(bias, jnp.float32))
        self.bias = jnp.pad(b, (0, self._np - out_features)).reshape(1, -1)

        self.input_scale = None
        self.output_scale = None

    def __call__(self, x):
        lead = x.shape[:-1]
        out_dtype = x.dtype
        x2d = x.reshape(-1, self.in_features)
        m = x2d.shape[0]

        tm = min(self.tile_m, _round_up(max(m, 1), 16))
        mp = _round_up(m, tm)
        xp = jnp.pad(x2d, ((0, mp - m), (0, self._kp - self.in_features)))

        # 1) per-tensor dynamic amax / scale of the activation
        amax = _per_tensor_amax(xp, tm, self.tile_k)
        x_scale = jnp.maximum(amax, SCALE_EPS) / FP8_E4M3_MAX
        inv_x_scale = (1.0 / x_scale).reshape(1, 1).astype(jnp.float32)
        # NOTE: traced value; valid for eager inspection only (leaks under jit).
        self.input_scale = x_scale

        # 2) quantize activation.  If there is a single N tile each x tile is
        #    consumed exactly once -> fuse the quantization into the matmul and
        #    skip the qx HBM round trip; otherwise materialize bf16 qx once.
        gn = self._np // self.tile_n
        fuse_quant = (gn == 1)
        lhs = xp if fuse_quant else _quantize_to_bf16(xp, inv_x_scale, tm,
                                                      self.tile_k)

        # 3) MXU matmul on quantized operands; scales/bias folded into the f32
        #    accumulator; |out| amax emitted only when quantize_output is set.
        cs = (x_scale * self.weight_scale).reshape(1, 1).astype(jnp.float32)
        res = _fp8_matmul(lhs, self.qweight, self.bias, cs, inv_x_scale,
                          fuse_quant, self.quantize_output, m,
                          out_dtype, tm, self.tile_n, self.tile_k)

        # 4) optional output re-quantization (amax fused into the matmul pass)
        if self.quantize_output:
            outp, oamax_part = res
            oamax = jnp.max(oamax_part)
            o_scale = jnp.maximum(oamax, SCALE_EPS) / FP8_E4M3_MAX
            self.output_scale = o_scale
            outp = _requant_output(
                outp,
                (1.0 / o_scale).reshape(1, 1).astype(jnp.float32),
                o_scale.reshape(1, 1).astype(jnp.float32),
                tm, self.tile_n)
        else:
            outp = res

        out = outp[:m, :self.out_features]
        return out.reshape(*lead, self.out_features).astype(out_dtype)


# --------------------------- pure-JAX reference ----------------------------- #

def _reference_forward(x, qweight, weight_scale, bias, quantize_output):
    amax = jnp.max(jnp.abs(x))
    scale = jnp.maximum(amax, SCALE_EPS) / FP8_E4M3_MAX
    q = jnp.clip(x / scale, -FP8_E4M3_MAX, FP8_E4M3_MAX).astype(jnp.float8_e4m3fn)
    a = q.astype(jnp.float32) * scale
    w = qweight.astype(jnp.float32) * weight_scale
    out = jnp.einsum('...k,nk->...n', a, w) + bias
    if quantize_output:
        oamax = jnp.max(jnp.abs(out))
        os = jnp.maximum(oamax, SCALE_EPS) / FP8_E4M3_MAX
        out = jnp.clip(out / os, -FP8_E4M3_MAX, FP8_E4M3_MAX) * os
    return out.astype(x.dtype)


if __name__ == "__main__":
    key = jax.random.PRNGKey(0)
    kx, kw, kb, kx2, kw2, kb2 = jax.random.split(key, 6)

    # Case 1: aligned shapes (fused-quantize path, gn == 1).
    B, S, IN, OUT = 2, 8, 128, 256
    x = jax.random.normal(kx, (B, S, IN), jnp.float32)
    w_fp = jax.random.normal(kw, (OUT, IN), jnp.float32)
    bias = 0.1 * jax.random.normal(kb, (OUT,), jnp.float32)

    w_amax = jnp.max(jnp.abs(w_fp))
    weight_scale = (jnp.maximum(w_amax, SCALE_EPS) / FP8_E4M3_MAX).astype(jnp.float32)
    qweight = (jnp.clip(w_fp / weight_scale, -FP8_E4M3_MAX, FP8_E4M3_MAX)
               .astype(jnp.float8_e4m3fn).astype(jnp.float32))

    ref = _reference_forward(x, qweight, weight_scale, bias, False)
    ref_q = _reference_forward(x, qweight, weight_scale, bias, True)

    module = FP8StaticLinearQuantizer(IN, OUT, qweight, weight_scale, bias,
                                      quantize_output=False)
    out = jax.block_until_ready(module(x))
    module_q = FP8StaticLinearQuantizer(IN, OUT, qweight, weight_scale, bias,
                                        quantize_output=True)
    out_q = jax.block_until_ready(module_q(x))

    assert out.shape == (B, S, OUT) and out.dtype == x.dtype
    assert jnp.allclose(out, ref, rtol=5e-2, atol=2e-1)
    assert jnp.allclose(out_q, ref_q, rtol=5e-2, atol=2e-1)

    # Case 2: ragged M, K/N not multiples of 128 (padding + row masking).
    IN2, OUT2 = 96, 160
    x2 = jax.random.normal(kx2, (3, 5, IN2), jnp.float32)
    w2 = jax.random.normal(kw2, (OUT2, IN2), jnp.float32)
    b2 = 0.1 * jax.random.normal(kb2, (OUT2,), jnp.float32)
    ws2 = (jnp.maximum(jnp.max(jnp.abs(w2)), SCALE_EPS) / FP8_E4M3_MAX
           ).astype(jnp.float32)
    qw2 = (jnp.clip(w2 / ws2, -FP8_E4M3_MAX, FP8_E4M3_MAX)
           .astype(jnp.float8_e4m3fn).astype(jnp.float32))

    module2 = FP8StaticLinearQuantizer(IN2, OUT2, qw2, ws2, b2,
                                       quantize_output=True)
    out2 = jax.block_until_ready(module2(x2))
    ref2 = _reference_forward(x2, qw2, ws2, b2, True)
    assert out2.shape == (3, 5, OUT2)
    assert jnp.allclose(out2, ref2, rtol=5e-2, atol=2e-1)

    # Case 3: small tile_n forces gn > 1 (standalone quantize pass, both
    # with and without the fused output-amax epilogue).
    module3 = FP8StaticLinearQuantizer(IN, OUT, qweight, weight_scale, bias,
                                       quantize_output=False, tile_n=128)
    out3 = jax.block_until_ready(module3(x))
    assert jnp.allclose(out3, ref, rtol=5e-2, atol=2e-1)

    module3q = FP8StaticLinearQuantizer(IN, OUT, qweight, weight_scale, bias,
                                        quantize_output=True, tile_n=128)
    out3q = jax.block_until_ready(module3q(x))
    assert jnp.allclose(out3q, ref_q, rtol=5e-2, atol=2e-1)

    print("KERNEL_OK")
</pallas_src>

<mosaic_0001>
module attributes {stable_mosaic.version = 11 : i64} {
  func.func @_amax_kernel(%arg0: i32, %arg1: i32, %arg2: memref<16x128xf32, #tpu.memory_space<vmem>>, %arg3: memref<8x128xf32, #tpu.memory_space<vmem>>) attributes {dimension_semantics = [#tpu.dimension_semantics<parallel>, #tpu.dimension_semantics<arbitrary>], iteration_bounds = array<i64: 1, 1>, scalar_prefetch = 0 : i64, scratch_operands = 0 : i64, tpu.core_type = #tpu.core_type<tc>, window_params = [{transform_indices = @transform_0, window_bounds = array<i64: 16, 128>}, {transform_indices = @transform_1, window_bounds = array<i64: 8, 128>}]} {
    %c0_i32 = arith.constant 0 : i32
    %0 = arith.cmpi eq, %arg1, %c0_i32 : i32
    %1 = arith.extui %0 : i1 to i32
    %c0_i32_0 = arith.constant 0 : i32
    %2 = arith.cmpi ne, %1, %c0_i32_0 : i32
    scf.if %2 {
      %cst_6 = arith.constant 0.000000e+00 : f32
      %13 = vector.broadcast %cst_6 : f32 to vector<8x128xf32>
      %c0_7 = arith.constant 0 : index
      %c0_8 = arith.constant 0 : index
      %14 = vector.load %arg3[%c0_7, %c0_8] : memref<8x128xf32, #tpu.memory_space<vmem>>, vector<8x128xf32>
      tpu.vector_store %arg3[%c0_7, %c0_8], %13 {strides = array<i32>} : memref<8x128xf32, #tpu.memory_space<vmem>>, vector<8x128xf32>,
    } else {
    }
    %c0 = arith.constant 0 : index
    %c0_1 = arith.constant 0 : index
    %3 = vector.load %arg2[%c0, %c0_1] : memref<16x128xf32, #tpu.memory_space<vmem>>, vector<16x128xf32>
    %4 = math.absf %3 : vector<16x128xf32>
    %5 = vector.shape_cast %4 : vector<16x128xf32> to vector<1x16x128xf32>
    %cst = arith.constant dense<0xFF800000> : vector<1xf32>
    %6 = vector.multi_reduction <maximumf>, %5, %cst [1, 2] : vector<1x16x128xf32> to vector<1xf32>
    %7 = vector.shape_cast %6 : vector<1xf32> to vector<1x1x1xf32>
    %8 = vector.extract %7[0, 0, 0] : f32 from vector<1x1x1xf32>
    %c0_2 = arith.constant 0 : index
    %c0_3 = arith.constant 0 : index
    %9 = vector.load %arg3[%c0_2, %c0_3] : memref<8x128xf32, #tpu.memory_space<vmem>>, vector<8x128xf32>
    %10 = vector.broadcast %8 : f32 to vector<8x128xf32>
    %11 = arith.maximumf %9, %10 : vector<8x128xf32>
    %c0_4 = arith.constant 0 : index
    %c0_5 = arith.constant 0 : index
    %12 = vector.load %arg3[%c0_4, %c0_5] : memref<8x128xf32, #tpu.memory_space<vmem>>, vector<8x128xf32>
    tpu.vector_store %arg3[%c0_4, %c0_5], %11 {strides = array<i32>} : memref<8x128xf32, #tpu.memory_space<vmem>>, vector<8x128xf32>,
    return
  }
  func.func @transform_0(%arg0: i32, %arg1: i32) -> (i32, i32) {
    %c0_i32 = arith.constant 0 : i32
    return %arg0, %arg1 : i32, i32
  }
  func.func @transform_1(%arg0: i32, %arg1: i32) -> (i32, i32) {
    %c0_i32 = arith.constant 0 : i32
    %c0_i32_0 = arith.constant 0 : i32
    return %arg0, %c0_i32 : i32, i32
  }
}

</mosaic_0001>

<bundles_post_ra>
// kernel: tpu_custom_call.1
= control target key start
LH: loop header
LB: loop body
LE: loop exit
PB: predicated region body
PF: predicated region fallthrough
CT: control target
= control target key end

     0   :  { %6 = vsyncpa [#allocation3], 0  ;;  %s154_s0 = inlined_call_operand.hbm [shape: f32[16,128], index: 0, kind: input, shape index: {}]   ;;  %s155_s1 = inlined_call_operand.hbm [shape: f32[8,128], index: 1, kind: output, shape index: {}]  }
   0x1   :  { %7 = vsyncpa [#allocation4], 0  ;;  %s116_s6 = smov [#allocation2]   ;;  %s68_s10 = scalar_lea.hbm %s154_s0, 256 }
   0x2   :  { %s13_s7 = sshll.u32 %s116_s6, 4  ;;  %p69_p0 = scmp.ne.s32.totalorder %s154_s0, %s68_s10  ;;  %s14_s7 = int_to_ptr.vmem [resolvable:$true] %s13_s7 }
   0x3   :  { %p72_p1 = scmp.lt.u32.totalorder %s68_s10, %s154_s0 }
   0x5   :  { %p74_p2 = pnand %p72_p1, %p69_p0 }
   0x7   :  { %77 = shalt.err (!%p74_p2)
}
   0x8   :  { %s78_s15 = scalar_lea.vmem %s14_s7, 256  ;;  %p83_p4 = scmp.lt.s32.totalorder %s14_s7, %s14_s7 }
   0x9   :  { %p79_p3 = scmp.ne.s32.totalorder %s14_s7, %s78_s15  ;;  %p84_p5 = scmp.lt.s32.totalorder %s78_s15, %s78_s15 }
   0xb   :  { %p85_p6 = por %p84_p5, %p83_p4 }
   0xd   :  { %p86_p7 = pnand %p85_p6, %p79_p3 }
   0xf   :  { %89 = shalt.err (!%p86_p7)
}
  0x10   :  { %s117_s16 = smov 128   ;;  %s118_s17 = smov 8  }
  0x11   :  { %19 = dma.hbm_to_vmem [thread:$0]  %s154_s0, 256, %s14_s7, [#allocation3], %s117_s16, %s117_s16, %s118_s17  }
  0x12   :  { %112 = dma.done.wait [#allocation3], 256  }
  0x13   :  { %113 = vsyncadd [#allocation3], 4294967040  ;;  %v28_v0 = vld [vmem:[#allocation2] sm:$0xff]  ;;  %v29_v1 = vld [vmem:[#allocation2 + $0x8] sm:$0xff]  ;;  %s119_s20 = smov [#allocation5]  }
  0x14   :  { %v30_v2 = vand.u32 2147483647, %v28_v0  ;;  %v31_v3 = vand.u32 2147483647, %v29_v1  ;;  %s52_s21 = sshll.u32 %s119_s20, 4  ;;  %s53_s21 = int_to_ptr.vmem [resolvable:$true] %s52_s21 }
  0x15   :  { %s90_s0 = scalar_lea.vmem %s53_s21, 128  ;;  %p95_p9 = scmp.lt.s32.totalorder %s53_s21, %s53_s21 }
  0x16   :  { %v32_v4 = vmax.f32.f32 %v30_v2, %v31_v3  ;;  %p91_p8 = scmp.ne.s32.totalorder %s53_s21, %s90_s0  ;;  %p96_p10 = scmp.lt.s32.totalorder %s90_s0, %s90_s0 }
  0x18   :  { %33 = vmax.xlane.f32.xlu0 %v32_v4  ;;  %p97_p11 = por %p96_p10, %p95_p9 }
  0x1a   :  { %p98_p12 = pnand %p97_p11, %p91_p8 }
  0xa5   :  { %v34_v5 = vpop.xlane.xlu0 %33 }
  0xa6   :  { %v35_v6 = vrot.slane %v34_v5, 4 }
  0xa8   :  { %v36_v7 = vmax.f32 %v34_v5, %v35_v6 }
  0xaa   :  { %v37_v8 = vrot.slane %v36_v7, 2 }
  0xac   :  { %v38_v9 = vmax.f32 %v36_v7, %v37_v8 }
  0xae   :  { %v39_v10 = vrot.slane %v38_v9, 1 }
  0xb0   :  { %v40_v11 = vmax.f32 %v38_v9, %v39_v10 }
  0xb2   :  { %61 = vpush %v40_v11 }
  0xe3   :  { %s62_s22 = spop %61 }
  0xe4   :  { %v43_v12 = vstv %s62_s22 }
  0xe5   :  { %v44_v13 = vmax.f32 %v43_v12, 0.0 }
  0xe7   :  { %45 = vst [vmem:[#allocation5] sm:$0xff] %v44_v13 }
  0xe8   :  { %101 = shalt.err (!%p98_p12)
}
  0xe9   :  { %s102_s25 = scalar_lea.hbm %s155_s1, 128 }
  0xea   :  { %p103_p13 = scmp.ne.s32.totalorder %s155_s1, %s102_s25  ;;  %p106_p0 = scmp.lt.u32.totalorder %s102_s25, %s155_s1 }
  0xec   :  { %p108_p1 = pnand %p106_p0, %p103_p13 }
  0xee   :  { %111 = shalt.err (!%p108_p1)
}
  0xef   :  { %55 = dma.vmem_to_hbm [thread:$0]  %s53_s21, 128, %s155_s1, [#allocation4]  }
  0xf0   :  { %114 = dma.done.wait [#allocation4], 128  }
  0xf1   :  { %115 = vsyncadd [#allocation4], 4294967168 }
  0xf2   :  { %59 = vsyncpa [#allocation3], 1 }
  0xf3   :  { %60 = vsyncpa [#allocation4], 1 }

</bundles_post_ra>
